<compile_context>
chip_gen: v6e
topology: v6e:2x2x1
jax: 0.10.0
libtpu: 0.0.40
codegen_flags: <defaults>
</compile_context>

<pallas_src>
import jax
import jax.numpy as jnp
from jax.experimental import pallas as pl
from jax.experimental.pallas import tpu as pltpu


def _dma_flatten_kernel(x_hbm_ref, o_hbm_ref, sem):
    # Single-descriptor HBM->HBM copy: no VMEM round trip, no grid, no masked
    # stores.  Purely DMA/HBM-bandwidth bound on v5e / v6e / v7x.
    cp = pltpu.make_async_copy(x_hbm_ref, o_hbm_ref, sem)
    cp.start()
    cp.wait()


def flatten_pallas(x: jax.Array, full: bool = False, copy: bool = True) -> jax.Array:
    """Pallas equivalent of Flatten(full).forward(x).

    copy=False is the recommended production fast path: flatten is a
    metadata-only reshape, so no kernel (and no extra HBM traffic) is needed.
    copy=True materializes the flattened tensor via one HBM->HBM DMA.
    """
    B = x.shape[0]
    D = 1
    for s in x.shape[1:]:
        D *= s

    # Metadata-only, element-order-preserving reshape (matches torch's
    # x.view(B, -1) for a contiguous NCHW input).
    x2d = x.reshape(B, D)

    if not copy:
        # Zero-copy fast path (review optimization #1).
        return x2d.reshape(-1) if full else x2d

    nbytes = x.size * jnp.dtype(x.dtype).itemsize

    out = pl.pallas_call(
        _dma_flatten_kernel,
        out_shape=jax.ShapeDtypeStruct((B, D), x.dtype),
        # Leave both operands in place (HBM); kernel gets raw refs and drives
        # the copy with one DMA descriptor.
        in_specs=[pl.BlockSpec(memory_space=pl.ANY)],
        out_specs=pl.BlockSpec(memory_space=pl.ANY),
        scratch_shapes=[pltpu.SemaphoreType.DMA(())],
        # Purely memory-bound hint for XLA's scheduler: N bytes read + N written.
        cost_estimate=pl.CostEstimate(
            flops=0, transcendentals=0, bytes_accessed=2 * nbytes
        ),
    )(x2d)

    if full:
        # torch: x.view(-1) — zero-cost metadata reshape of the kernel output.
        out = out.reshape(-1)
    return out


if __name__ == "__main__":
    key = jax.random.PRNGKey(0)
    # Flatten has no parameters; shape consistent with a small conv feature map.
    x = jax.random.normal(key, (2, 4, 16, 16), dtype=jnp.float32)

    ref2d = x.reshape(x.shape[0], -1)
    ref1d = x.reshape(-1)

    # full=False: (B, C*H*W) via the Pallas DMA kernel.
    y = flatten_pallas(x, full=False)
    jax.block_until_ready(y)
    assert y.shape == (2, 4 * 16 * 16)
    assert jnp.array_equal(y, ref2d)

    # full=True: rank-1 (B*C*H*W,) via the Pallas DMA kernel.
    y_full = flatten_pallas(x, full=True)
    jax.block_until_ready(y_full)
    assert y_full.shape == (2 * 4 * 16 * 16,)
    assert jnp.array_equal(y_full, ref1d)

    # Zero-copy fast path (no pallas_call) gives identical results.
    z = flatten_pallas(x, full=False, copy=False)
    z_full = flatten_pallas(x, full=True, copy=False)
    jax.block_until_ready((z, z_full))
    assert jnp.array_equal(z, ref2d)
    assert jnp.array_equal(z_full, ref1d)

    print("KERNEL_OK")
</pallas_src>

<mosaic_0001>
module attributes {stable_mosaic.version = 11 : i64} {
  func.func @_dma_flatten_kernel(%arg0: memref<2x1024xf32, #tpu.memory_space<any>>, %arg1: memref<2x1024xf32, #tpu.memory_space<any>>, %arg2: memref<!tpu.dma_semaphore, #tpu.memory_space<semaphore_mem>>) attributes {dimension_semantics = [], scalar_prefetch = 0 : i64, scratch_operands = 1 : i64, tpu.core_type = #tpu.core_type<tc>} {
    tpu.enqueue_dma source(%arg0 : memref<2x1024xf32, #tpu.memory_space<any>>) target(%arg1 : memref<2x1024xf32, #tpu.memory_space<any>>) target_semaphore(%arg2 : memref<!tpu.dma_semaphore, #tpu.memory_space<semaphore_mem>>)
    tpu.wait_dma2 semaphore(%arg2 : memref<!tpu.dma_semaphore, #tpu.memory_space<semaphore_mem>>) src(%arg0 : memref<2x1024xf32, #tpu.memory_space<any>>) dst(%arg1 : memref<2x1024xf32, #tpu.memory_space<any>>)
    return
  }
}

</mosaic_0001>

<bundles_post_ra>
// kernel: tpu_custom_call.1
= control target key start
LH: loop header
LB: loop body
LE: loop exit
PB: predicated region body
PF: predicated region fallthrough
CT: control target
= control target key end

     0   :  { %s29_s6 = smov [#allocation2]   ;;  %s30_s7 = smov 131072   ;;  %s48_s0 = inlined_call_operand.hbm [shape: f32[2,1024], index: 0, kind: input, shape index: {}]   ;;  %s49_s1 = inlined_call_operand.hbm [shape: f32[2,1024], index: 1, kind: output, shape index: {}]  }
   0x1   :  { %s31_s8 = smov 0  }
   0x2   :  { %12 = dma.general %s48_s0, 256, %s49_s1, %s29_s6, %s30_s7, [#allocation4], %s31_s8, 0  }
   0x3   :  { %27 = dma.done.wait [#allocation2], 256 }
   0x4   :  { %28 = vsyncadd [#allocation2], 4294967040 }
   0x5   :  { %17 = vsyncmov [#allocation2] }
   0x8   :  { %s18_s13 = vpop.sfrf %17 }
   0x9   :  { %p23_p0 = scmp.ne.s32.totalorder %s18_s13, 0 }
   0xb   :  { %22 = shalt.err (%p23_p0)  }

</bundles_post_ra>
